<compile_context>
chip_gen: v5e
topology: v5e:2x2
jax: 0.10.0
libtpu: 0.0.40
codegen_flags: <defaults>
</compile_context>

<pallas_src>
import jax
import jax.numpy as jnp
from jax.experimental import pallas as pl
from jax.experimental.pallas import tpu as pltpu


def bayesian_nn_kernel(x_ref, w1_ref, b1_ref, w2_ref, b2_ref, wh_ref, bh_ref,
                       out_ref):
    """Whole forward pass for one batch tile, fused in VMEM.

    x_ref  : (TB, D)  input tile in MXU operand dtype (bf16 default)
    w*_ref : PyTorch-layout weights (out, in) in MXU operand dtype
    b*_ref : (out, 1) float32 biases, broadcast along lanes
    out_ref: (8, TB)  float32; row 0 = mean, row 1 = std, rows 2..7 = padding
    """
    cdt = w1_ref.dtype                               # matmul operand dtype

    # Feature-major activations: batch lives on the 128-wide lane axis.
    xt = x_ref[...].T                                # (D, TB), XLU transpose

    # fc1 + relu: (H, D) @ (D, TB) -> (H, TB), f32 accumulation on the MXU.
    h1 = jnp.dot(w1_ref[...], xt,
                 preferred_element_type=jnp.float32) + b1_ref[...]
    h1 = jnp.maximum(h1, 0.0)

    # fc2 + relu: (H, H) @ (H, TB) -> (H, TB)
    h2 = jnp.dot(w2_ref[...], h1.astype(cdt),
                 preferred_element_type=jnp.float32) + b2_ref[...]
    h2 = jnp.maximum(h2, 0.0)

    # Fused, 8-row-padded heads: (8, H) @ (H, TB) -> (8, TB).
    head = jnp.dot(wh_ref[...], h2.astype(cdt),
                   preferred_element_type=jnp.float32) + bh_ref[...]

    # Single unmasked full-tile store, then exp only on the log_std row.
    out_ref[...] = head
    out_ref[1:2, :] = jnp.exp(head[1:2, :])


def prepare_params(params, matmul_dtype=jnp.bfloat16):
    """One-time re-layout of PyTorch-style params (hoisted out of the hot path).

    Returns (w1, b1, w2, b2, wh, bh):
      w1 (H, D), w2 (H, H), wh (8, H)   in `matmul_dtype`
      b1 (H, 1), b2 (H, 1), bh (8, 1)   in float32
    where wh/bh rows are [mean, log_std, 0, 0, 0, 0, 0, 0].
    """
    w1, b1, w2, b2, wm, bm, ws, bs = params
    H = w1.shape[0]

    wh = jnp.concatenate(
        [wm.astype(jnp.float32), ws.astype(jnp.float32),
         jnp.zeros((6, H), jnp.float32)], axis=0)                     # (8, H)
    bh = jnp.concatenate(
        [bm.astype(jnp.float32), bs.astype(jnp.float32),
         jnp.zeros((6,), jnp.float32)], axis=0)                       # (8,)

    return (w1.astype(matmul_dtype),
            b1.reshape(H, 1).astype(jnp.float32),
            w2.astype(matmul_dtype),
            b2.reshape(H, 1).astype(jnp.float32),
            wh.astype(matmul_dtype),
            bh.reshape(8, 1).astype(jnp.float32))


def bayesian_nn_forward(x, prepped, *, tb=None):
    """x: (B, D) float32; prepped from prepare_params.
    Returns (mean, std), each (B, 1) float32."""
    w1, b1, w2, b2, wh, bh = prepped
    B, D = x.shape
    H = w1.shape[0]
    cdt = w1.dtype

    # Batch padded to a multiple of 128 so every block is lane-dense.
    bp = -(-B // 128) * 128

    # Tile choice: 2 even steps when possible (feeds both v7x TensorCores),
    # otherwise a single step (minimizes the ~0.35us/step overhead on 1-TC
    # v5e/v6e). Always a multiple of 128.
    if tb is None:
        tb = bp // 2 if (bp >= 256 and bp % 256 == 0) else bp
    tb = max(128, min(tb, bp))
    tb = (tb // 128) * 128
    bp = -(-bp // tb) * tb                        # make bp an exact multiple of tb

    # Cast x in the wrapper so the streamed x DMA is already in operand dtype.
    xp = x.astype(cdt)
    if bp != B:
        xp = jnp.pad(xp, ((0, bp - B), (0, 0)))

    grid = (bp // tb,)
    const2d = lambda shape: pl.BlockSpec(shape, lambda i: (0, 0))

    out = pl.pallas_call(
        bayesian_nn_kernel,
        out_shape=jax.ShapeDtypeStruct((8, bp), jnp.float32),
        grid_spec=pltpu.PrefetchScalarGridSpec(
            num_scalar_prefetch=0,
            grid=grid,
            in_specs=[
                pl.BlockSpec((tb, D), lambda i: (i, 0)),   # x tile (no wrapper transpose)
                const2d((H, D)), const2d((H, 1)),          # fc1 (resident)
                const2d((H, H)), const2d((H, 1)),          # fc2 (resident)
                const2d((8, H)), const2d((8, 1)),          # fused padded head (resident)
            ],
            out_specs=pl.BlockSpec((8, tb), lambda i: (0, i)),  # lane-dense slab
        ),
        compiler_params=pltpu.CompilerParams(
            dimension_semantics=("parallel",)),            # batch tiles across TCs
    )(xp, w1, b1, w2, b2, wh, bh)

    mean = out[0, :B][:, None]                             # (B, 1)
    std = out[1, :B][:, None]                              # (B, 1)
    return mean, std


def init_params(key, input_dim, hidden_dim=64):
    """Deterministic init mimicking nn.Linear (uniform(+/- 1/sqrt(fan_in))).
    Weights stored in PyTorch (out_features, in_features) layout."""
    ks = jax.random.split(key, 8)

    def linear(kw, kb, fan_in, fan_out):
        bound = 1.0 / jnp.sqrt(float(fan_in))
        w = jax.random.uniform(kw, (fan_out, fan_in), jnp.float32, -bound, bound)
        b = jax.random.uniform(kb, (fan_out,), jnp.float32, -bound, bound)
        return w, b

    w1, b1 = linear(ks[0], ks[1], input_dim, hidden_dim)
    w2, b2 = linear(ks[2], ks[3], hidden_dim, hidden_dim)
    wm, bm = linear(ks[4], ks[5], hidden_dim, 1)
    ws, bs = linear(ks[6], ks[7], hidden_dim, 1)
    return (w1, b1, w2, b2, wm, bm, ws, bs)


def reference_forward(x, params):
    w1, b1, w2, b2, wm, bm, ws, bs = params
    h1 = jnp.maximum(x @ w1.T + b1, 0.0)
    h2 = jnp.maximum(h1 @ w2.T + b2, 0.0)
    mean = h2 @ wm.T + bm
    std = jnp.exp(h2 @ ws.T + bs)
    return mean, std


if __name__ == "__main__":
    key = jax.random.PRNGKey(0)
    k_x, k_p, k_x2 = jax.random.split(key, 3)

    B, INPUT_DIM, HIDDEN = 512, 16, 64            # 2 batch tiles of 256
    x = jax.random.normal(k_x, (B, INPUT_DIM), jnp.float32)
    params = init_params(k_p, INPUT_DIM, HIDDEN)
    ref_mean, ref_std = reference_forward(x, params)

    # f32 MXU operands: tight match against the XLA reference.
    prepped_f32 = prepare_params(params, matmul_dtype=jnp.float32)
    mean, std = bayesian_nn_forward(x, prepped_f32)
    jax.block_until_ready((mean, std))
    assert mean.shape == (B, 1) and std.shape == (B, 1)
    assert jnp.allclose(mean, ref_mean, atol=1e-4, rtol=1e-4)
    assert jnp.allclose(std, ref_std, atol=1e-4, rtol=1e-4)

    # Default bf16 MXU operands (fast path), f32 accumulation: looser tolerance.
    prepped_bf16 = prepare_params(params)                  # bf16 default
    mean_bf, std_bf = bayesian_nn_forward(x, prepped_bf16)
    jax.block_until_ready((mean_bf, std_bf))
    assert jnp.allclose(mean_bf, ref_mean, atol=5e-2, rtol=5e-2)
    assert jnp.allclose(std_bf, ref_std, atol=5e-2, rtol=5e-2)

    # Ragged batch (not a multiple of 128) exercises the padding path.
    B2 = 200
    x2 = jax.random.normal(k_x2, (B2, INPUT_DIM), jnp.float32)
    r_mean2, r_std2 = reference_forward(x2, params)
    mean2, std2 = bayesian_nn_forward(x2, prepped_bf16)
    jax.block_until_ready((mean2, std2))
    assert mean2.shape == (B2, 1) and std2.shape == (B2, 1)
    assert jnp.allclose(mean2, r_mean2, atol=5e-2, rtol=5e-2)
    assert jnp.allclose(std2, r_std2, atol=5e-2, rtol=5e-2)

    print("KERNEL_OK")
</pallas_src>

<mosaic_0001>
module attributes {stable_mosaic.version = 11 : i64} {
  func.func @bayesian_nn_kernel(%arg0: i32, %arg1: memref<256x16xf32, #tpu.memory_space<vmem>>, %arg2: memref<64x16xf32, #tpu.memory_space<vmem>>, %arg3: memref<64x1xf32, #tpu.memory_space<vmem>>, %arg4: memref<64x64xf32, #tpu.memory_space<vmem>>, %arg5: memref<64x1xf32, #tpu.memory_space<vmem>>, %arg6: memref<8x64xf32, #tpu.memory_space<vmem>>, %arg7: memref<8x1xf32, #tpu.memory_space<vmem>>, %arg8: memref<8x256xf32, #tpu.memory_space<vmem>>) attributes {dimension_semantics = [#tpu.dimension_semantics<parallel>], iteration_bounds = array<i64: 2>, scalar_prefetch = 0 : i64, scratch_operands = 0 : i64, tpu.core_type = #tpu.core_type<tc>, window_params = [{transform_indices = @transform_0, window_bounds = array<i64: 256, 16>}, {pipeline_mode = #tpu.pipeline_mode<synchronous>, transform_indices = @transform_1, window_bounds = array<i64: 64, 16>}, {pipeline_mode = #tpu.pipeline_mode<synchronous>, transform_indices = @transform_2, window_bounds = array<i64: 64, 1>}, {pipeline_mode = #tpu.pipeline_mode<synchronous>, transform_indices = @transform_3, window_bounds = array<i64: 64, 64>}, {pipeline_mode = #tpu.pipeline_mode<synchronous>, transform_indices = @transform_4, window_bounds = array<i64: 64, 1>}, {pipeline_mode = #tpu.pipeline_mode<synchronous>, transform_indices = @transform_5, window_bounds = array<i64: 8, 64>}, {pipeline_mode = #tpu.pipeline_mode<synchronous>, transform_indices = @transform_6, window_bounds = array<i64: 8, 1>}, {transform_indices = @transform_7, window_bounds = array<i64: 8, 256>}]} {
    %c0 = arith.constant 0 : index
    %c0_0 = arith.constant 0 : index
    %0 = vector.load %arg1[%c0, %c0_0] : memref<256x16xf32, #tpu.memory_space<vmem>>, vector<256x16xf32>
    %1 = tpu.transpose %0, [1, 0] : vector<256x16xf32> -> vector<16x256xf32>
    %c0_1 = arith.constant 0 : index
    %c0_2 = arith.constant 0 : index
    %2 = vector.load %arg2[%c0_1, %c0_2] : memref<64x16xf32, #tpu.memory_space<vmem>>, vector<64x16xf32>
    %cst = arith.constant dense<0.000000e+00> : vector<64x256xf32>
    %3 = tpu.matmul %2, %1, %cst {dimension_numbers = #tpu.dot_dimension_numbers<[1], [0], [0], [1], [0, 0, 1, 1], [], []>} : vector<64x16xf32>, vector<16x256xf32>, vector<64x256xf32> -> vector<64x256xf32>
    %c0_3 = arith.constant 0 : index
    %c0_4 = arith.constant 0 : index
    %4 = vector.load %arg3[%c0_3, %c0_4] : memref<64x1xf32, #tpu.memory_space<vmem>>, vector<64x1xf32>
    %5 = vector.broadcast %4 : vector<64x1xf32> to vector<64x256xf32>
    %6 = arith.addf %3, %5 : vector<64x256xf32>
    %cst_5 = arith.constant 0.000000e+00 : f32
    %7 = vector.broadcast %cst_5 : f32 to vector<64x256xf32>
    %8 = arith.maximumf %6, %7 : vector<64x256xf32>
    %c0_6 = arith.constant 0 : index
    %c0_7 = arith.constant 0 : index
    %9 = vector.load %arg4[%c0_6, %c0_7] : memref<64x64xf32, #tpu.memory_space<vmem>>, vector<64x64xf32>
    %cst_8 = arith.constant dense<0.000000e+00> : vector<64x256xf32>
    %10 = tpu.matmul %9, %8, %cst_8 {dimension_numbers = #tpu.dot_dimension_numbers<[1], [0], [0], [1], [0, 0, 1, 1], [], []>} : vector<64x64xf32>, vector<64x256xf32>, vector<64x256xf32> -> vector<64x256xf32>
    %c0_9 = arith.constant 0 : index
    %c0_10 = arith.constant 0 : index
    %11 = vector.load %arg5[%c0_9, %c0_10] : memref<64x1xf32, #tpu.memory_space<vmem>>, vector<64x1xf32>
    %12 = vector.broadcast %11 : vector<64x1xf32> to vector<64x256xf32>
    %13 = arith.addf %10, %12 : vector<64x256xf32>
    %cst_11 = arith.constant 0.000000e+00 : f32
    %14 = vector.broadcast %cst_11 : f32 to vector<64x256xf32>
    %15 = arith.maximumf %13, %14 : vector<64x256xf32>
    %c0_12 = arith.constant 0 : index
    %c0_13 = arith.constant 0 : index
    %16 = vector.load %arg6[%c0_12, %c0_13] : memref<8x64xf32, #tpu.memory_space<vmem>>, vector<8x64xf32>
    %cst_14 = arith.constant dense<0.000000e+00> : vector<8x256xf32>
    %17 = tpu.matmul %16, %15, %cst_14 {dimension_numbers = #tpu.dot_dimension_numbers<[1], [0], [0], [1], [0, 0, 1, 1], [], []>} : vector<8x64xf32>, vector<64x256xf32>, vector<8x256xf32> -> vector<8x256xf32>
    %c0_15 = arith.constant 0 : index
    %c0_16 = arith.constant 0 : index
    %18 = vector.load %arg7[%c0_15, %c0_16] : memref<8x1xf32, #tpu.memory_space<vmem>>, vector<8x1xf32>
    %19 = vector.broadcast %18 : vector<8x1xf32> to vector<8x256xf32>
    %20 = arith.addf %17, %19 : vector<8x256xf32>
    %c0_17 = arith.constant 0 : index
    %c0_18 = arith.constant 0 : index
    %21 = vector.load %arg8[%c0_17, %c0_18] : memref<8x256xf32, #tpu.memory_space<vmem>>, vector<8x256xf32>
    tpu.vector_store %arg8[%c0_17, %c0_18], %20 {strides = array<i32>} : memref<8x256xf32, #tpu.memory_space<vmem>>, vector<8x256xf32>,
    %22 = vector.extract_strided_slice %20 {offsets = [1, 0], sizes = [1, 256], strides = [1, 1]} : vector<8x256xf32> to vector<1x256xf32>
    %23 = math.exp %22 : vector<1x256xf32>
    %c1 = arith.constant 1 : index
    %c0_19 = arith.constant 0 : index
    %24 = vector.load %arg8[%c1, %c0_19] : memref<8x256xf32, #tpu.memory_space<vmem>>, vector<1x256xf32>
    tpu.vector_store %arg8[%c1, %c0_19], %23 {strides = array<i32>} : memref<8x256xf32, #tpu.memory_space<vmem>>, vector<1x256xf32>,
    return
  }
  func.func @transform_0(%arg0: i32) -> (i32, i32) {
    %c0_i32 = arith.constant 0 : i32
    %c0_i32_0 = arith.constant 0 : i32
    return %arg0, %c0_i32 : i32, i32
  }
  func.func @transform_1(%arg0: i32) -> (i32, i32) {
    %c0_i32 = arith.constant 0 : i32
    %c0_i32_0 = arith.constant 0 : i32
    %c0_i32_1 = arith.constant 0 : i32
    return %c0_i32, %c0_i32_0 : i32, i32
  }
  func.func @transform_2(%arg0: i32) -> (i32, i32) {
    %c0_i32 = arith.constant 0 : i32
    %c0_i32_0 = arith.constant 0 : i32
    %c0_i32_1 = arith.constant 0 : i32
    return %c0_i32, %c0_i32_0 : i32, i32
  }
  func.func @transform_3(%arg0: i32) -> (i32, i32) {
    %c0_i32 = arith.constant 0 : i32
    %c0_i32_0 = arith.constant 0 : i32
    %c0_i32_1 = arith.constant 0 : i32
    return %c0_i32, %c0_i32_0 : i32, i32
  }
  func.func @transform_4(%arg0: i32) -> (i32, i32) {
    %c0_i32 = arith.constant 0 : i32
    %c0_i32_0 = arith.constant 0 : i32
    %c0_i32_1 = arith.constant 0 : i32
    return %c0_i32, %c0_i32_0 : i32, i32
  }
  func.func @transform_5(%arg0: i32) -> (i32, i32) {
    %c0_i32 = arith.constant 0 : i32
    %c0_i32_0 = arith.constant 0 : i32
    %c0_i32_1 = arith.constant 0 : i32
    return %c0_i32, %c0_i32_0 : i32, i32
  }
  func.func @transform_6(%arg0: i32) -> (i32, i32) {
    %c0_i32 = arith.constant 0 : i32
    %c0_i32_0 = arith.constant 0 : i32
    %c0_i32_1 = arith.constant 0 : i32
    return %c0_i32, %c0_i32_0 : i32, i32
  }
  func.func @transform_7(%arg0: i32) -> (i32, i32) {
    %c0_i32 = arith.constant 0 : i32
    %c0_i32_0 = arith.constant 0 : i32
    return %c0_i32, %arg0 : i32, i32
  }
}

</mosaic_0001>

<bundles_post_ra>
// kernel: tpu_custom_call.1
= control target key start
LH: loop header
LB: loop body
LE: loop exit
PB: predicated region body
PF: predicated region fallthrough
CT: control target
= control target key end

     0   :  { %12 = vsyncpa [#allocation3], 0  ;;  %s1430_s0 = inlined_call_operand.vmem [shape: f32[512,16], index: 0, kind: input, shape index: {}]   ;;  %s1431_s1 = inlined_call_operand.vmem [shape: f32[64,16], index: 1, kind: input, shape index: {}]   ;;  %s1432_s2 = inlined_call_operand.vmem [shape: f32[64,1], index: 2, kind: input, shape index: {}]   ;;  %s1433_s3 = inlined_call_operand.vmem [shape: f32[64,64], index: 3, kind: input, shape index: {}]   ;;  %s1434_s4 = inlined_call_operand.vmem [shape: f32[64,1], index: 4, kind: input, shape index: {}]   ;;  %s1435_s5 = inlined_call_operand.vmem [shape: f32[8,64], index: 5, kind: input, shape index: {}]   ;;  %s1436_s6 = inlined_call_operand.vmem [shape: f32[8,1], index: 6, kind: input, shape index: {}]   ;;  %s1437_s7 = inlined_call_operand.hbm [shape: f32[8,512], index: 7, kind: output, shape index: {}]  }
   0x1   :  { %14 = vsyncpa [#allocation3 + $0x1], 0  ;;  %s1144_s24 = smov 0   ;;  %s1146_s25 = smov 0  }
   0x2   :  { %s1148_s26 = smov 0   ;;  %s1150_s27 = smov 0  }
   0x3 LB: > { %s1165_s28 = sadd.s32 4294967295, %s1101_s27   ;;  %s912_s29 = sadd.s32 4294967294, %s1101_s27   ;;  %s1101_s27 = sphi %s1150_s27, %s1443_s27   ;;  %s1097_s26 = sphi %s1148_s26, %s1442_s26   ;;  %s1093_s25 = sphi %s1146_s25, %s1441_s25   ;;  %s1089_s24 = sphi %s1144_s24, %s1440_s24  }
   0x4   : > { %s1169_s30 = sadd.s32 1, %s1101_s27   ;;  %s179_s8 = sadd.s32 1, %s1097_s26 }
   0x5   : > { %s176_s9 = ssub.s32 %s1101_s27, %s1169_s30  ;;  %p189_p0 = scmp.ne.s32.totalorder %s1097_s26, %s1093_s25 }
   0x6   : > { %p177_p1 = scmp.eq.s32.totalorder %s176_s9, 0  ;;  %p190_p2 = scmp.eq.s32.totalorder %s1165_s28, 1 }
   0x7   : > { %p195_p3 = scmp.ne.s32.totalorder %s1093_s25, %s1089_s24  ;;  %p196_p4 = scmp.eq.s32.totalorder %s912_s29, 1 }
   0x8   : > { %s1180_s10 = scalar_select %p177_p1, %s1097_s26, %s179_s8  }
   0x9   : > { %p1182_p5 = por %p190_p2, %p189_p0  ;;  %p1186_p6 = por %p196_p4, %p195_p3 }
   0xa   : > { %p915_p7 = scmp.ge.s32.totalorder %s1101_s27, 1  ;;  %p241_p8 = scmp.lt.s32.totalorder %s1101_s27, 3 }
   0xc   : > { %p242_p9 = pnand %p915_p7, %p241_p8 }
   0xd   : > { %s917_s13 = sshll.u32 (!%p242_p9), %s1165_s28, 5  ;;  %s270_s16 = sand.u32 (!%p242_p9), 1, %s1093_s25  }
   0xe   : > { %245 = sbr.rel (%p242_p9) target bundleno = 649 (0x289), region = 48  ;;  %p274_p10 = scmp.lt.s32.totalorder (!%p242_p9), %s917_s13, 63 }
   0xf   : > { %s916_s18 = sshll.u32 (!%p242_p9), %s270_s16, 4  ;;  %s991_s20 = sshll.u32 (!%p242_p9), %s1165_s28, 4 }
  0x10   : > { %s272_s19 = scalar_lea.vmem (!%p242_p9), [#allocation2], %s916_s18  ;;  %s848_s22 = scalar_lea.hbm (!%p242_p9), %s1437_s7, %s991_s20 }
  0x11   : > { %s850_s23 = sshll.u32 (!%p242_p9), %s272_s19, 4  ;;  %s852_s29 = sshll.u32 (!%p242_p9), %s848_s22, 4  ;;  %s851_s23 = int_to_ptr.vmem [resolvable:$true] %s850_s23  ;;  %s853_s29 = int_to_ptr.hbm [resolvable:$true] %s852_s29 }
  0x12   : > { %s837_s8 = scalar_lea.sflag (!%p242_p9), [#allocation3], %s270_s16  ;;  %s1053_s9 = sshra.s32 (!%p242_p9), %s853_s29, 4  ;;  %s1054_s9 = int_to_ptr.hbm [resolvable:$true] %s1053_s9 }
  0x13   : > { %s1445_s13 = smov (!%p274_p10, %s917_s13), 63  ;;  %vm368_vm0 = vcmask 130048   ;;  %v325_v14 = vld [vmem:[%s1432_s2 + $0x28] sm:$0xff]  ;;  %v1103_v17 = vmov 0   ;;  %v327_v20 = vld [vmem:[%s1432_s2 + $0x38] sm:$0xff]  ;;  %v324_v21 = vld [vmem:[%s1432_s2 + $0x20] sm:$0xff]  ;;  %p1060_p0 = scmp.lt.s32.totalorder %s1054_s9, %s1437_s7 }
  0x14   : > { %s918_s14 = sshll.u32 %s1445_s13, 3  ;;  %1033 = vset.pattern.permute.xlu1 %v1103_v17  ;;  %1032 = vset.pattern.permute.xlu0 %v1103_v17  ;;  %v326_v26 = vld [vmem:[%s1432_s2 + $0x30] sm:$0xff]  ;;  %v320_v27 = vld [vmem:[%s1432_s2] sm:$0xff]  ;;  %v321_v32 = vld [vmem:[%s1432_s2 + $0x8] sm:$0xff]  ;;  %vm643_vm1 = vcmask 523264   ;;  %s1055_s28 = scalar_lea.hbm %s1054_s9, 16 }
  0x15   : > { %s1196_s17 = scalar_lea.vmem %s1430_s0, %s918_s14  ;;  %355 = vperm.xlu1 %1033, %v325_v14   ;;  %1034 = vset.pattern.permute.xlu2 %v1103_v17  ;;  %v312_v39 = vld [vmem:[%s1431_s1] sm:$0xff]  ;;  %v313_v40 = vld [vmem:[%s1431_s1 + $0x8] sm:$0xff]  ;;  %v323_v41 = vld [vmem:[%s1432_s2 + $0x18] sm:$0xff]  ;;  %p1056_p11 = scmp.ne.s32.totalorder %s1054_s9, %s1055_s28 }
  0x16   : > { %v295_v0 = vld [vmem:[%s1196_s17 + $0x78] sm:$0xff]  ;;  %v294_v2 = vld [vmem:[%s1196_s17 + $0x70] sm:$0xff]  ;;  %v293_v4 = vld [vmem:[%s1196_s17 + $0x68] sm:$0xff]  ;;  %365 = vperm.xlu0 %1032, %v327_v20   ;;  %345 = vperm.xlu2 %1034, %v323_v41   ;;  %s1059_s15 = scalar_lea.hbm %s1437_s7, 32 }
  0x17   : > { %v311_v1 = vld [vmem:[%s1196_s17 + $0xf8] sm:$0xff]  ;;  %919 = vmatpush.xpose.msk.msra.mxu0 %vm368_vm0, %v295_v0  ;;  %v310_v3 = vld [vmem:[%s1196_s17 + $0xf0] sm:$0xff]  ;;  %v309_v5 = vld [vmem:[%s1196_s17 + $0xe8] sm:$0xff]  ;;  %p1057_p12 = pnand %p1056_p11, %p1182_p5  ;;  %p1061_p1 = scmp.lt.s32.totalorder %s1059_s15, %s1055_s28 }
  0x18   : > { %943 = vmatpush.xpose.msk.msra.mxu1 %vm368_vm0, %v311_v1  ;;  %v292_v6 = vld [vmem:[%s1196_s17 + $0x60] sm:$0xff]  ;;  %v291_v8 = vld [vmem:[%s1196_s17 + $0x58] sm:$0xff]  ;;  %v290_v10 = vld [vmem:[%s1196_s17 + $0x50] sm:$0xff] }
  0x19   : > { %v308_v7 = vld [vmem:[%s1196_s17 + $0xe0] sm:$0xff]  ;;  %v307_v9 = vld [vmem:[%s1196_s17 + $0xd8] sm:$0xff]  ;;  %v306_v11 = vld [vmem:[%s1196_s17 + $0xd0] sm:$0xff]  ;;  %p1058_p13 = pneg %p1057_p12  ;;  %p1062_p2 = por %p1061_p1, %p1060_p0 }
  0x1a   : > { %v289_v12 = vld [vmem:[%s1196_s17 + $0x48] sm:$0xff]  ;;  %v288_v15 = vld [vmem:[%s1196_s17 + $0x40] sm:$0xff]  ;;  %v287_v18 = vld [vmem:[%s1196_s17 + $0x38] sm:$0xff] }
  0x1b   : > { %920 = vmatpush.xpose.msk.msra.mxu0 %vm368_vm0, %v294_v2  ;;  %v305_v13 = vld [vmem:[%s1196_s17 + $0xc8] sm:$0xff]  ;;  %v304_v16 = vld [vmem:[%s1196_s17 + $0xc0] sm:$0xff]  ;;  %v303_v19 = vld [vmem:[%s1196_s17 + $0xb8] sm:$0xff]  ;;  %p1063_p3 = pnand %p1062_p2, %p1058_p13 }
  0x1c   : > { %944 = vmatpush.xpose.msk.msra.mxu1 %vm368_vm0, %v310_v3  ;;  %v286_v22 = vld [vmem:[%s1196_s17 + $0x30] sm:$0xff]  ;;  %v285_v24 = vld [vmem:[%s1196_s17 + $0x28] sm:$0xff]  ;;  %v284_v28 = vld [vmem:[%s1196_s17 + $0x20] sm:$0xff] }
  0x1d   : > { %v302_v23 = vld [vmem:[%s1196_s17 + $0xb0] sm:$0xff]  ;;  %350 = vperm.xlu1 %1033, %v324_v21   ;;  %v301_v25 = vld [vmem:[%s1196_s17 + $0xa8] sm:$0xff]  ;;  %v300_v29 = vld [vmem:[%s1196_s17 + $0xa0] sm:$0xff] }
  0x1e   : > { %360 = vperm.xlu0 %1032, %v326_v26   ;;  %v283_v30 = vld [vmem:[%s1196_s17 + $0x18] sm:$0xff]  ;;  %v282_v33 = vld [vmem:[%s1196_s17 + $0x10] sm:$0xff]  ;;  %v281_v35 = vld [vmem:[%s1196_s17 + $0x8] sm:$0xff] }
  0x1f   : > { %921 = vmatpush.xpose.msk.msra.mxu0 %vm368_vm0, %v293_v4  ;;  %v299_v31 = vld [vmem:[%s1196_s17 + $0x98] sm:$0xff]  ;;  %v298_v34 = vld [vmem:[%s1196_s17 + $0x90] sm:$0xff]  ;;  %v297_v36 = vld [vmem:[%s1196_s17 + $0x88] sm:$0xff] }
  0x20   : > { %945 = vmatpush.xpose.msk.msra.mxu1 %vm368_vm0, %v309_v5  ;;  %v280_v37 = vld [vmem:[%s1196_s17] sm:$0xff]  ;;  %v601_v42 = vld [vmem:[%s1434_s4 + $0x30] sm:$0xff]  ;;  %v600_v44 = vld [vmem:[%s1434_s4 + $0x28] sm:$0xff] }
  0x21   : > { %v296_v38 = vld [vmem:[%s1196_s17 + $0x80] sm:$0xff]  ;;  %v314_v43 = vld [vmem:[%s1431_s1 + $0x10] sm:$0xff]  ;;  %v598_v46 = vld [vmem:[%s1434_s4 + $0x18] sm:$0xff] }
  0x22   : > { %v322_v45 = vld [vmem:[%s1432_s2 + $0x10] sm:$0xff]  ;;  %v315_v47 = vld [vmem:[%s1431_s1 + $0x18] sm:$0xff]  ;;  %v595_v49 = vld [vmem:[%s1434_s4] sm:$0xff] }
  0x23   : > { %922 = vmatpush.xpose.msk.msra.mxu0 %vm368_vm0, %v292_v6  ;;  %340 = vperm.xlu2 %1034, %v322_v45   ;;  %v597_v48 = vld [vmem:[%s1434_s4 + $0x10] sm:$0xff]  ;;  %v602_v50 = vld [vmem:[%s1434_s4 + $0x38] sm:$0xff]  ;;  %v316_v51 = vld [vmem:[%s1431_s1 + $0x20] sm:$0xff] }
  0x24   : > { %946 = vmatpush.xpose.msk.msra.mxu1 %vm368_vm0, %v308_v7  ;;  %v767_v52 = vld [vmem:[%s1436_s6] sm:$0xff]  ;;  %v317_v54 = vld [vmem:[%s1431_s1 + $0x28] sm:$0xff]  ;;  %v318_v56 = vld [vmem:[%s1431_s1 + $0x30] sm:$0xff] }
  0x25   : > { %330 = vperm.xlu1 %1033, %v320_v27   ;;  %v599_v53 = vld [vmem:[%s1434_s4 + $0x20] sm:$0xff]  ;;  %v596_v55 = vld [vmem:[%s1434_s4 + $0x8] sm:$0xff]  ;;  %v319_v57 = vld [vmem:[%s1431_s1 + $0x38] sm:$0xff] }
  0x26   : > { %335 = vperm.xlu0 %1032, %v321_v32  }
  0x27   : > { %923 = vmatpush.xpose.msk.msra.mxu0 %vm368_vm0, %v291_v8 }
  0x28   : > { %947 = vmatpush.xpose.msk.msra.mxu1 %vm368_vm0, %v307_v9 }
  0x2b   : > { %924 = vmatpush.xpose.msk.msra.mxu0 %vm368_vm0, %v290_v10  ;;  %640 = vperm.xlu2 %1034, %v602_v50   ;;  %v587_v50 = vld [vmem:[%s1433_s3] sm:$0xff] }
  0x2c   : > { %948 = vmatpush.xpose.msk.msra.mxu1 %vm368_vm0, %v306_v11 }
  0x2d   : > { %630 = vperm.xlu1 %1033, %v600_v44  }
  0x2e   : > { %635 = vperm.xlu0 %1032, %v601_v42  }
  0x2f   : > { %925 = vmatpush.xpose.msk.msra.mxu0 %vm368_vm0, %v289_v12 }
  0x30   : > { %949 = vmatpush.xpose.msk.msra.mxu1 %vm368_vm0, %v305_v13 }
  0x33   : > { %926 = vmatpush.xpose.msk.msra.mxu0 %vm368_vm0, %v288_v15  ;;  %625 = vperm.xlu2 %1034, %v599_v53   ;;  %v590_v53 = vld [vmem:[%s1433_s3 + $0x18] sm:$0xff] }
  0x34   : > { %950 = vmatpush.xpose.msk.msra.mxu1 %vm368_vm0, %v304_v16 }
  0x35   : > { %615 = vperm.xlu1 %1033, %v597_v48  }
  0x36   : > { %620 = vperm.xlu0 %1032, %v598_v46  }
  0x37   : > { %927 = vmatpush.xpose.msk.msra.mxu0 %vm368_vm0, %v287_v18 }
  0x38   : > { %951 = vmatpush.xpose.msk.msra.mxu1 %vm368_vm0, %v303_v19 }
  0x3b   : > { %928 = vmatpush.xpose.msk.msra.mxu0 %vm368_vm0, %v286_v22  ;;  %610 = vperm.xlu2 %1034, %v596_v55   ;;  %v592_v55 = vld [vmem:[%s1433_s3 + $0x28] sm:$0xff] }
  0x3c   : > { %952 = vmatpush.xpose.msk.msra.mxu1 %vm368_vm0, %v302_v23 }
  0x3d   : > { %770 = vperm.xlu1 %1033, %v767_v52   ;;  %v589_v52 = vld [vmem:[%s1433_s3 + $0x10] sm:$0xff] }
  0x3e   : > { %605 = vperm.xlu0 %1032, %v595_v49  }
  0x3f   : > { %929 = vmatpush.xpose.msk.msra.mxu0 %vm368_vm0, %v285_v24 }
  0x40   : > { %953 = vmatpush.xpose.msk.msra.mxu1 %vm368_vm0, %v301_v25 }
  0x43   : > { %930 = vmatpush.xpose.msk.msra.mxu0 %vm368_vm0, %v284_v28 }
  0x44   : > { %954 = vmatpush.xpose.msk.msra.mxu1 %vm368_vm0, %v300_v29 }
  0x47   : > { %931 = vmatpush.xpose.msk.msra.mxu0 %vm368_vm0, %v283_v30 }
  0x48   : > { %955 = vmatpush.xpose.msk.msra.mxu1 %vm368_vm0, %v299_v31 }
  0x4b   : > { %932 = vmatpush.xpose.msk.msra.mxu0 %vm368_vm0, %v282_v33 }
  0x4c   : > { %956 = vmatpush.xpose.msk.msra.mxu1 %vm368_vm0, %v298_v34 }
  0x4f   : > { %933 = vmatpush.xpose.msk.msra.mxu0 %vm368_vm0, %v281_v35 }
  0x50   : > { %957 = vmatpush.xpose.msk.msra.mxu1 %vm368_vm0, %v297_v36 }
  0x53   : > { %934 = vmatpush.xpose.msk.msra.mxu0 %vm368_vm0, %v280_v37 }
  0x54   : > { %958 = vmatpush.xpose.msk.msra.mxu1 %vm368_vm0, %v296_v38 }
  0x56   : > { %935 = vmatmul.msk.f32.vlgmr.msra.gmra.mxu0 %vm368_vm0, %v312_v39 }
  0x57   : > { %959 = vmatmul.msk.f32.vlgmr.msra.gmra.mxu1 %vm368_vm0, %v312_v39 }
  0x5e   : > { %936 = vmatmul.msk.f32.gmra.mxu0 %vm368_vm0, %v313_v40 }
  0x5f   : > { %960 = vmatmul.msk.f32.gmra.mxu1 %vm368_vm0, %v313_v40 }
  0x66   : > { %937 = vmatmul.msk.f32.gmra.mxu0 %vm368_vm0, %v314_v43 }
  0x67   : > { %961 = vmatmul.msk.f32.gmra.mxu1 %vm368_vm0, %v314_v43 }
  0x6e   : > { %938 = vmatmul.msk.f32.gmra.mxu0 %vm368_vm0, %v315_v47 }
  0x6f   : > { %962 = vmatmul.msk.f32.gmra.mxu1 %vm368_vm0, %v315_v47 }
  0x70   : > { %v346_v10 = vpop.permute.xlu2 %345 }
  0x76   : > { %939 = vmatmul.msk.f32.gmra.mxu0 %vm368_vm0, %v316_v51 }
  0x77   : > { %963 = vmatmul.msk.f32.gmra.mxu1 %vm368_vm0, %v316_v51  ;;  %v588_v51 = vld [vmem:[%s1433_s3 + $0x8] sm:$0xff] }
  0x7d   : > { %v341_v27 = vpop.permute.xlu2 %340 }
  0x7e   : > { %940 = vmatmul.msk.f32.gmra.mxu0 %vm368_vm0, %v317_v54 }
  0x7f   : > { %964 = vmatmul.msk.f32.gmra.mxu1 %vm368_vm0, %v317_v54  ;;  %v591_v54 = vld [vmem:[%s1433_s3 + $0x20] sm:$0xff] }
  0x86   : > { %941 = vmatmul.msk.f32.gmra.mxu0 %vm368_vm0, %v318_v56 }
  0x87   : > { %965 = vmatmul.msk.f32.gmra.mxu1 %vm368_vm0, %v318_v56  ;;  %v356_v7 = vpop.permute.xlu1 %355  ;;  %v593_v56 = vld [vmem:[%s1433_s3 + $0x30] sm:$0xff] }
  0x88   : > { %v366_v6 = vpop.permute.xlu0 %365 }
  0x8e   : > { %942 = vmatmul.msk.f32.gmra.mxu0 %vm368_vm0, %v319_v57 }
  0x8f   : > { %966 = vmatmul.msk.f32.gmra.mxu1 %vm368_vm0, %v319_v57  ;;  %v351_v12 = vpop.permute.xlu1 %350  ;;  %v594_v57 = vld [vmem:[%s1433_s3 + $0x38] sm:$0xff] }
  0x90   : > { %v361_v11 = vpop.permute.xlu0 %360 }
  0x97   : > { %v331_v37 = vpop.permute.xlu1 %330 }
  0x98   : > { %v336_v32 = vpop.permute.xlu0 %335 }
  0xd3   : > { %v506_v58 = vpop.f32.mrf.mxu0 }
  0xd4   : > { %v547_v59 = vpop.f32.mrf.mxu1  ;;  %v507_v42 = vadd.f32 %v506_v58, %v331_v37 }
  0xd5   : > { %v548_v43 = vadd.f32 %v547_v59, %v331_v37 }
  0xd6   : > { %v571_v48 = vmax.f32 %v507_v42, 0.0 }
  0xd7   : > { %v572_v49 = vmax.f32 %v548_v43, 0.0 }
  0xdb   : > { %v509_v60 = vpop.f32.mrf.mxu0 }
  0xdc   : > { %v550_v61 = vpop.f32.mrf.mxu1  ;;  %v510_v38 = vadd.f32 %v509_v60, %v336_v32 }
  0xdd   : > { %v551_v39 = vadd.f32 %v550_v61, %v336_v32 }
  0xde   : > { %v573_v46 = vmax.f32 %v510_v38, 0.0 }
  0xdf   : > { %v574_v47 = vmax.f32 %v551_v39, 0.0 }
  0xe3   : > { %v512_v62 = vpop.f32.mrf.mxu0 }
  0xe4   : > { %v553_v63 = vpop.f32.mrf.mxu1  ;;  %v513_v33 = vadd.f32 %v512_v62, %v341_v27 }
  0xe5   : > { %v554_v34 = vadd.f32 %v553_v63, %v341_v27 }
  0xe6   : > { %v575_v44 = vmax.f32 %v513_v33, 0.0 }
  0xe7   : > { %v576_v45 = vmax.f32 %v554_v34, 0.0 }
  0xeb   : > { %v515_v0 = vpop.f32.mrf.mxu0 }
  0xec   : > { %v556_v1 = vpop.f32.mrf.mxu1  ;;  %v516_v28 = vadd.f32 %v515_v0, %v346_v10 }
  0xed   : > { %v557_v29 = vadd.f32 %v556_v1, %v346_v10  ;;  %v631_v10 = vpop.permute.xlu1 %630 }
  0xee   : > { %v577_v40 = vmax.f32 %v516_v28, 0.0 }
  0xef   : > { %v578_v41 = vmax.f32 %v557_v29, 0.0 }
  0xf3   : > { %v518_v2 = vpop.f32.mrf.mxu0 }
  0xf4   : > { %v559_v3 = vpop.f32.mrf.mxu1  ;;  %v519_v23 = vadd.f32 %v518_v2, %v351_v12 }
  0xf5   : > { %v560_v24 = vadd.f32 %v559_v3, %v351_v12 }
  0xf6   : > { %v579_v35 = vmax.f32 %v519_v23, 0.0 }
  0xf7   : > { %v580_v36 = vmax.f32 %v560_v24, 0.0 }
  0xfb   : > { %v521_v4 = vpop.f32.mrf.mxu0 }
  0xfc   : > { %v562_v5 = vpop.f32.mrf.mxu1  ;;  %v522_v19 = vadd.f32 %v521_v4, %v356_v7 }
  0xfd   : > { %v563_v20 = vadd.f32 %v562_v5, %v356_v7  ;;  %v636_v7 = vpop.permute.xlu0 %635 }
  0xfe   : > { %v581_v30 = vmax.f32 %v522_v19, 0.0 }
  0xff   : > { %v582_v31 = vmax.f32 %v563_v20, 0.0 }
 0x103   : > { %v524_v8 = vpop.f32.mrf.mxu0 }
 0x104   : > { %v565_v9 = vpop.f32.mrf.mxu1  ;;  %v525_v15 = vadd.f32 %v524_v8, %v361_v11 }
 0x105   : > { %v566_v16 = vadd.f32 %v565_v9, %v361_v11 }
 0x106   : > { %v583_v25 = vmax.f32 %v525_v15, 0.0 }
 0x107   : > { %v584_v26 = vmax.f32 %v566_v16, 0.0 }
 0x10b   : > { %v527_v13 = vpop.f32.mrf.mxu0 }
 0x10c   : > { %v568_v14 = vpop.f32.mrf.mxu1  ;;  %v528_v17 = vadd.f32 %v527_v13, %v366_v6 }
 0x10d   : > { %v569_v18 = vadd.f32 %v568_v14, %v366_v6  ;;  %v641_v6 = vpop.permute.xlu2 %640 }
 0x10e   : > { %v585_v21 = vmax.f32 %v528_v17, 0.0 }
 0x10f   : > { %v586_v22 = vmax.f32 %v569_v18, 0.0  ;;  %v621_v18 = vpop.permute.xlu0 %620 }
 0x110   : > { %676 = vmatpush.msra.mxu2 %v585_v21 }
 0x111   : > { %717 = vmatpush.msra.mxu3 %v586_v22 }
 0x112   : > { %677 = vmatpush.msra.mxu2 %v583_v25 }
 0x113   : > { %718 = vmatpush.msra.mxu3 %v584_v26 }
 0x114   : > { %678 = vmatpush.msra.mxu2 %v581_v30 }
 0x115   : > { %719 = vmatpush.msra.mxu3 %v582_v31  ;;  %v626_v11 = vpop.permute.xlu2 %625  ;;  %v616_v31 = vpop.permute.xlu1 %615 }
 0x116   : > { %679 = vmatpush.msra.mxu2 %v579_v35 }
 0x117   : > { %720 = vmatpush.msra.mxu3 %v580_v36 }
 0x118   : > { %680 = vmatpush.msra.mxu2 %v577_v40 }
 0x119   : > { %721 = vmatpush.msra.mxu3 %v578_v41  ;;  %v606_v41 = vpop.permute.xlu0 %605 }
 0x11a   : > { %681 = vmatpush.msra.mxu2 %v575_v44 }
 0x11b   : > { %722 = vmatpush.msra.mxu3 %v576_v45 }
 0x11c   : > { %682 = vmatpush.msra.mxu2 %v573_v46 }
 0x11d   : > { %723 = vmatpush.msra.mxu3 %v574_v47  ;;  %v611_v36 = vpop.permute.xlu2 %610 }
 0x11e   : > { %683 = vmatpush.msra.mxu2 %v571_v48 }
 0x11f   : > { %724 = vmatpush.msra.mxu3 %v572_v49  ;;  %967 = vmatmul.msk.f32.vlgmr.msra.gmra.mxu2 %vm643_vm1, %v587_v50 }
 0x120   : > { %975 = vmatmul.msk.f32.vlgmr.msra.gmra.mxu3 %vm643_vm1, %v587_v50  ;;  %v766_v50 = vld [vmem:[%s1435_s5] sm:$0xff] }
 0x127   : > { %968 = vmatmul.msk.f32.gmra.mxu2 %vm643_vm1, %v588_v51 }
 0x128   : > { %976 = vmatmul.msk.f32.gmra.mxu3 %vm643_vm1, %v588_v51  ;;  %v771_v51 = vpop.permute.xlu1 %770 }
 0x12f   : > { %969 = vmatmul.msk.f32.gmra.mxu2 %vm643_vm1, %v589_v52 }
 0x130   : > { %977 = vmatmul.msk.f32.gmra.mxu3 %vm643_vm1, %v589_v52 }
 0x137   : > { %970 = vmatmul.msk.f32.gmra.mxu2 %vm643_vm1, %v590_v53 }
 0x138   : > { %978 = vmatmul.msk.f32.gmra.mxu3 %vm643_vm1, %v590_v53 }
 0x13f   : > { %971 = vmatmul.msk.f32.gmra.mxu2 %vm643_vm1, %v591_v54 }
 0x140   : > { %979 = vmatmul.msk.f32.gmra.mxu3 %vm643_vm1, %v591_v54 }
 0x147   : > { %972 = vmatmul.msk.f32.gmra.mxu2 %vm643_vm1, %v592_v55 }
 0x148   : > { %980 = vmatmul.msk.f32.gmra.mxu3 %vm643_vm1, %v592_v55 }
 0x14f   : > { %973 = vmatmul.msk.f32.gmra.mxu2 %vm643_vm1, %v593_v56 }
 0x150   : > { %981 = vmatmul.msk.f32.gmra.mxu3 %vm643_vm1, %v593_v56 }
 0x157   : > { %974 = vmatmul.msk.f32.gmra.mxu2 %vm643_vm1, %v594_v57 }
 0x158   : > { %982 = vmatmul.msk.f32.gmra.mxu3 %vm643_vm1, %v594_v57 }
 0x1a2   : > { %v685_v58 = vpop.f32.mrf.mxu2 }
 0x1a3   : > { %v726_v59 = vpop.f32.mrf.mxu3  ;;  %v686_v42 = vadd.f32 %v685_v58, %v606_v41 }
 0x1a4   : > { %v727_v43 = vadd.f32 %v726_v59, %v606_v41 }
 0x1a5   : > { %v750_v48 = vmax.f32 %v686_v42, 0.0 }
 0x1a6   : > { %v751_v49 = vmax.f32 %v727_v43, 0.0 }
 0x1aa   : > { %v688_v60 = vpop.f32.mrf.mxu2 }
 0x1ab   : > { %v729_v61 = vpop.f32.mrf.mxu3  ;;  %v689_v37 = vadd.f32 %v688_v60, %v611_v36  ;;  %v829_v60 = vlaneseq }
 0x1ac   : > { %v730_v38 = vadd.f32 %v729_v61, %v611_v36 }
 0x1ad   : > { %v752_v46 = vmax.f32 %v689_v37, 0.0  ;;  %vm831_vm2 = vcmp.lt.s32.totalorder %v829_v60, 256 }
 0x1ae   : > { %v753_v47 = vmax.f32 %v730_v38, 0.0 }
 0x1b2   : > { %v691_v62 = vpop.f32.mrf.mxu2 }
 0x1b3   : > { %v732_v63 = vpop.f32.mrf.mxu3  ;;  %v692_v32 = vadd.f32 %v691_v62, %v616_v31 }
 0x1b4   : > { %v733_v33 = vadd.f32 %v732_v63, %v616_v31 }
 0x1b5   : > { %v754_v44 = vmax.f32 %v692_v32, 0.0 }
 0x1b6   : > { %v755_v45 = vmax.f32 %v733_v33, 0.0 }
 0x1ba   : > { %v694_v0 = vpop.f32.mrf.mxu2 }
 0x1bb   : > { %v735_v1 = vpop.f32.mrf.mxu3  ;;  %v695_v27 = vadd.f32 %v694_v0, %v621_v18 }
 0x1bc   : > { %v736_v28 = vadd.f32 %v735_v1, %v621_v18 }
 0x1bd   : > { %v756_v39 = vmax.f32 %v695_v27, 0.0 }
 0x1be   : > { %v757_v40 = vmax.f32 %v736_v28, 0.0 }
 0x1c2   : > { %v697_v2 = vpop.f32.mrf.mxu2 }
 0x1c3   : > { %v738_v3 = vpop.f32.mrf.mxu3  ;;  %v698_v23 = vadd.f32 %v697_v2, %v626_v11 }
 0x1c4   : > { %v739_v24 = vadd.f32 %v738_v3, %v626_v11 }
 0x1c5   : > { %v758_v34 = vmax.f32 %v698_v23, 0.0 }
 0x1c6   : > { %v759_v35 = vmax.f32 %v739_v24, 0.0 }
 0x1ca   : > { %v700_v4 = vpop.f32.mrf.mxu2 }
 0x1cb   : > { %v741_v5 = vpop.f32.mrf.mxu3  ;;  %v701_v19 = vadd.f32 %v700_v4, %v631_v10 }
 0x1cc   : > { %v742_v20 = vadd.f32 %v741_v5, %v631_v10 }
 0x1cd   : > { %v760_v29 = vmax.f32 %v701_v19, 0.0 }
 0x1ce   : > { %v761_v30 = vmax.f32 %v742_v20, 0.0 }
 0x1d2   : > { %v703_v8 = vpop.f32.mrf.mxu2 }
 0x1d3   : > { %v744_v9 = vpop.f32.mrf.mxu3  ;;  %v704_v14 = vadd.f32 %v703_v8, %v636_v7 }
 0x1d4   : > { %v745_v15 = vadd.f32 %v744_v9, %v636_v7 }
 0x1d5   : > { %v762_v25 = vmax.f32 %v704_v14, 0.0 }
 0x1d6   : > { %v763_v26 = vmax.f32 %v745_v15, 0.0 }
 0x1da   : > { %v706_v12 = vpop.f32.mrf.mxu2 }
 0x1db   : > { %v747_v13 = vpop.f32.mrf.mxu3  ;;  %v707_v16 = vadd.f32 %v706_v12, %v641_v6 }
 0x1dc   : > { %v748_v17 = vadd.f32 %v747_v13, %v641_v6 }
 0x1dd   : > { %v764_v21 = vmax.f32 %v707_v16, 0.0 }
 0x1de   : > { %v765_v22 = vmax.f32 %v748_v17, 0.0 }
 0x1df   : > { %784 = vmatpush.msrb.mxu2 %v764_v21 }
 0x1e0   : > { %804 = vmatpush.msrb.mxu3 %v765_v22 }
 0x1e1   : > { %785 = vmatpush.msrb.mxu2 %v762_v25 }
 0x1e2   : > { %805 = vmatpush.msrb.mxu3 %v763_v26 }
 0x1e3   : > { %786 = vmatpush.msrb.mxu2 %v760_v29 }
 0x1e4   : > { %806 = vmatpush.msrb.mxu3 %v761_v30 }
 0x1e5   : > { %787 = vmatpush.msrb.mxu2 %v758_v34 }
 0x1e6   : > { %807 = vmatpush.msrb.mxu3 %v759_v35 }
 0x1e7   : > { %788 = vmatpush.msrb.mxu2 %v756_v39 }
 0x1e8   : > { %808 = vmatpush.msrb.mxu3 %v757_v40 }
 0x1e9   : > { %789 = vmatpush.msrb.mxu2 %v754_v44 }
 0x1ea   : > { %809 = vmatpush.msrb.mxu3 %v755_v45 }
 0x1eb   : > { %790 = vmatpush.msrb.mxu2 %v752_v46 }
 0x1ec   : > { %810 = vmatpush.msrb.mxu3 %v753_v47 }
 0x1ed   : > { %791 = vmatpush.msrb.mxu2 %v750_v48 }
 0x1ee   : > { %811 = vmatpush.msrb.mxu3 %v751_v49  ;;  %983 = vmatmul.msk.f32.vlgmr.msrb.gmra.mxu2 %vm643_vm1, %v766_v50 }
 0x1ef   : > { %984 = vmatmul.msk.f32.vlgmr.msrb.gmra.mxu3 %vm643_vm1, %v766_v50 }
 0x271   : > { %v793_v52 = vpop.f32.mrf.mxu2 }
 0x272   : > { %v813_v53 = vpop.f32.mrf.mxu3  ;;  %v794_v54 = vadd.f32 %v793_v52, %v771_v51 }
 0x273   : > { %v814_v55 = vadd.f32 %v813_v53, %v771_v51 }
 0x274   : > { %816 = vst [vmem:[%s272_s19] sm:$0xff] %v794_v54  ;;  %v818_v56 = vmul.f32 1.442695, %v794_v54 }
 0x275   : > { %v820_v57 = vmul.f32 1.442695, %v814_v55  ;;  %817 = vst [vmem:[%s272_s19 + $0x8] sm:$0xff] %v814_v55 }
 0x276   : > { %1035 = vpow2.f32 %v818_v56 }
 0x277   : > { %1037 = vpow2.f32 %v820_v57 }
 0x27c   : > { %v1036_v58 = vpop.eup %1035 }
 0x27d   : > { %v1038_v59 = vpop.eup %1037  ;;  %824 = vst [vmem:[#allocation1] sm:$0xff] %v1036_v58 }
 0x27e   : > { %825 = vst [vmem:[#allocation1 + $0x9] sm:$0xff] %v1038_v59 }
 0x285   : > { %v827_v61 = vld [vmem:[#allocation1 + $0x1] ss:$9 sm:$0xff] }
 0x286   : > { %985 = vst.msk [vmem:[%s272_s19 + $0x1] ss:$8 sm:$0x3] %vm831_vm2, %v827_v61 }
 0x287   : > { %1066 = shalt.err (!%p1063_p3)
}
 0x288   : > { %992 = dma.vmem_to_hbm [thread:$0]  (%p1182_p5), %s851_s23, 256, %s853_s29, %s837_s8  }
 0x289 PF: > { %p998_p4 = scmp.ge.s32.totalorder %s1101_s27, 2  ;;  %s864_s16 = sand.u32 1, %s1089_s24  }
 0x28a   : > { %s865_s19 = scalar_lea.sflag [#allocation3], %s864_s16 }
 0x28b   : > { %p995_p7 = pnand %p998_p4, %p1186_p6 }
 0x28d   : > { %p996_p8 = pneg %p995_p7 }
 0x28f   : > { %1084 = dma.done.wait (%p996_p8), %s865_s19, 256  }
 0x290   : > { %1086 = vsyncadd (%p996_p8), %s865_s19, 4294967040  ;;  %p17_p9 = scmp.ge.s32.totalorder %s1169_s30, 4   ;;  %s1440_s24 = smov %s1093_s25 }
 0x291   : > { %s1441_s25 = smov %s1097_s26  ;;  %s1442_s26 = smov %s1180_s10 }
 0x292   : > { %s1443_s27 = smov %s1169_s30  ;;  %19 = sbr.rel (!%p17_p9) target bundleno = 3 (0x3), region = 85 }
 0x297   :  { %871 = vsyncpa [#allocation3], 1 }
 0x298   :  { %873 = vsyncpa [#allocation3 + $0x1], 1 }

</bundles_post_ra>
